<compile_context>
chip_gen: v6e
topology: v6e:2x2x1
jax: 0.10.0
libtpu: 0.0.40
codegen_flags: <defaults>
</compile_context>

<pallas_src>
import functools

import jax
import jax.numpy as jnp
from jax.experimental import pallas as pl
from jax.experimental.pallas import tpu as pltpu


def _hinge_partial_kernel(out_ref, lab_ref, psum_ref, *, margin, n, block_n,
                          needs_mask):
    """Per-column partial sums of relu(scores - correct + margin) for one row block."""
    i = pl.program_id(0)

    scores = out_ref[...].astype(jnp.float32)              # (block_n, c)
    labels = lab_ref[...]                                   # (block_n, 1) int32
    bn, c = scores.shape

    # One-hot gather of the correct-class score along the lane axis (VPU only,
    # no data-dependent indexing).
    col_ids = jax.lax.broadcasted_iota(jnp.int32, (bn, c), dimension=1)
    onehot = (col_ids == labels).astype(jnp.float32)         # (bn, c)
    correct = jnp.sum(scores * onehot, axis=-1, keepdims=True)  # (bn, 1)

    margins = scores - correct + jnp.float32(margin)
    relu = jnp.maximum(margins, 0.0)

    if needs_mask:
        # Mask rows past the true batch size (partial last block reads padding).
        row_ids = i * block_n + jax.lax.broadcasted_iota(
            jnp.int32, (bn, 1), dimension=0)
        relu = jnp.where(row_ids < n, relu, 0.0)

    # Per-column partial sums for this row block; the lane-axis reduce and
    # normalization happen outside in f32.
    psum_ref[...] = jnp.sum(relu, axis=0, keepdims=True).reshape(1, 1, c)


def _choose_block_n(n: int, c: int, itemsize: int) -> int:
    """Largest row tile (multiple of 8, <=4096) keeping ~4 MiB per scores buffer."""
    budget = 4 * 1024 * 1024
    max_rows = max(8, budget // max(1, c * itemsize))
    bn = min(4096, max_rows)
    bn = max(8, (bn // 8) * 8)
    if bn >= n:
        return n  # single block covering all rows (block == full dim is legal)
    return bn


def hinge_loss(outputs: jax.Array, labels: jax.Array, margin: float = 1.0,
               block_n: int | None = None) -> jax.Array:
    """Pallas TPU implementation of HingeLoss.forward.

    outputs: (batch, num_classes) float
    labels:  (batch,) int
    returns: scalar float32 loss = mean(relu(outputs - correct + margin)) - margin
    """
    n, c = outputs.shape
    labels2d = labels.astype(jnp.int32).reshape(n, 1)

    if block_n is None:
        block_n = _choose_block_n(n, c, outputs.dtype.itemsize)
    num_blocks = pl.cdiv(n, block_n)
    needs_mask = (n % block_n) != 0

    kernel = functools.partial(
        _hinge_partial_kernel, margin=float(margin), n=n, block_n=block_n,
        needs_mask=needs_mask)

    partials = pl.pallas_call(
        kernel,
        out_shape=jax.ShapeDtypeStruct((num_blocks, 1, c), jnp.float32),
        grid=(num_blocks,),
        in_specs=[
            pl.BlockSpec((block_n, c), lambda i: (i, 0)),   # scores tile
            pl.BlockSpec((block_n, 1), lambda i: (i, 0)),   # labels tile
        ],
        out_specs=pl.BlockSpec((1, 1, c), lambda i: (i, 0, 0)),  # per-block partials
        compiler_params=pltpu.CompilerParams(
            dimension_semantics=("parallel",)),
        cost_estimate=pl.CostEstimate(
            flops=5 * n * c,
            transcendentals=0,
            bytes_accessed=n * c * outputs.dtype.itemsize + n * 4
            + num_blocks * c * 4),
    )(outputs, labels2d)

    # Tiny final reduction + normalization in f32 outside the kernel.
    total = jnp.sum(partials, dtype=jnp.float32)
    return total / jnp.float32(n * c) - jnp.float32(margin)


def _reference(outputs, labels, margin):
    n = labels.shape[0]
    correct = outputs[jnp.arange(n), labels][:, None]
    return jnp.maximum(outputs - correct + margin, 0.0).mean() - margin


if __name__ == "__main__":
    key = jax.random.PRNGKey(0)
    k_out, k_lab = jax.random.split(key)

    # Small shapes consistent with the module: (batch, num_classes).
    batch, num_classes = 8, 32
    outputs = jax.random.normal(k_out, (batch, num_classes), dtype=jnp.float32)
    labels = jax.random.randint(k_lab, (batch,), 0, num_classes, dtype=jnp.int32)

    loss = hinge_loss(outputs, labels, margin=1.0)
    jax.block_until_ready(loss)
    ref = _reference(outputs, labels, 1.0)
    assert jnp.allclose(loss, ref, atol=1e-5, rtol=1e-5), (loss, ref)

    # Exercise the multi-block + partial-last-block (masked) path with a tiny tile.
    k_out2, k_lab2 = jax.random.split(jax.random.PRNGKey(1))
    n2, c2 = 100, 32
    outputs2 = jax.random.normal(k_out2, (n2, c2), dtype=jnp.float32)
    labels2 = jax.random.randint(k_lab2, (n2,), 0, c2, dtype=jnp.int32)

    loss2 = hinge_loss(outputs2, labels2, margin=0.5, block_n=8)
    jax.block_until_ready(loss2)
    ref2 = _reference(outputs2, labels2, 0.5)
    assert jnp.allclose(loss2, ref2, atol=1e-5, rtol=1e-5), (loss2, ref2)

    print("KERNEL_OK")
</pallas_src>

<mosaic_0001>
module attributes {stable_mosaic.version = 11 : i64} {
  func.func @_hinge_partial_kernel(%arg0: i32, %arg1: memref<8x32xf32, #tpu.memory_space<vmem>>, %arg2: memref<8x1xi32, #tpu.memory_space<vmem>>, %arg3: memref<1x1x32xf32, #tpu.memory_space<vmem>>) attributes {dimension_semantics = [#tpu.dimension_semantics<parallel>], iteration_bounds = array<i64: 1>, scalar_prefetch = 0 : i64, scratch_operands = 0 : i64, tpu.core_type = #tpu.core_type<tc>, window_params = [{transform_indices = @transform_0, window_bounds = array<i64: 8, 32>}, {transform_indices = @transform_1, window_bounds = array<i64: 8, 1>}, {transform_indices = @transform_2, window_bounds = array<i64: 1, 1, 32>}]} {
    %c0 = arith.constant 0 : index
    %c0_0 = arith.constant 0 : index
    %0 = vector.load %arg1[%c0, %c0_0] : memref<8x32xf32, #tpu.memory_space<vmem>>, vector<8x32xf32>
    %c0_1 = arith.constant 0 : index
    %c0_2 = arith.constant 0 : index
    %1 = vector.load %arg2[%c0_1, %c0_2] : memref<8x1xi32, #tpu.memory_space<vmem>>, vector<8x1xi32>
    %2 = tpu.iota {dimensions = array<i32: 1>} : vector<8x32xi32>
    %3 = vector.broadcast %1 : vector<8x1xi32> to vector<8x32xi32>
    %4 = arith.cmpi eq, %2, %3 : vector<8x32xi32>
    %5 = arith.extui %4 : vector<8x32xi1> to vector<8x32xi32>
    %6 = arith.sitofp %5 : vector<8x32xi32> to vector<8x32xf32>
    %7 = arith.mulf %0, %6 : vector<8x32xf32>
    %cst = arith.constant dense<0.000000e+00> : vector<8xf32>
    %8 = vector.multi_reduction <add>, %7, %cst [1] : vector<8x32xf32> to vector<8xf32>
    %9 = vector.shape_cast %8 : vector<8xf32> to vector<8x1xf32>
    %10 = vector.broadcast %9 : vector<8x1xf32> to vector<8x32xf32>
    %11 = arith.subf %0, %10 : vector<8x32xf32>
    %cst_3 = arith.constant 1.000000e+00 : f32
    %12 = vector.broadcast %cst_3 : f32 to vector<8x32xf32>
    %13 = arith.addf %11, %12 : vector<8x32xf32>
    %cst_4 = arith.constant 0.000000e+00 : f32
    %14 = vector.broadcast %cst_4 : f32 to vector<8x32xf32>
    %15 = arith.maximumf %13, %14 : vector<8x32xf32>
    %cst_5 = arith.constant dense<0.000000e+00> : vector<32xf32>
    %16 = vector.multi_reduction <add>, %15, %cst_5 [0] : vector<8x32xf32> to vector<32xf32>
    %17 = vector.shape_cast %16 : vector<32xf32> to vector<1x32xf32>
    %18 = vector.shape_cast %17 : vector<1x32xf32> to vector<1x1x32xf32>
    %c0_6 = arith.constant 0 : index
    %c0_7 = arith.constant 0 : index
    %c0_8 = arith.constant 0 : index
    %19 = vector.load %arg3[%c0_6, %c0_7, %c0_8] : memref<1x1x32xf32, #tpu.memory_space<vmem>>, vector<1x1x32xf32>
    tpu.vector_store %arg3[%c0_6, %c0_7, %c0_8], %18 {strides = array<i32>} : memref<1x1x32xf32, #tpu.memory_space<vmem>>, vector<1x1x32xf32>,
    return
  }
  func.func @transform_0(%arg0: i32) -> (i32, i32) {
    %c0_i32 = arith.constant 0 : i32
    %c0_i32_0 = arith.constant 0 : i32
    return %arg0, %c0_i32 : i32, i32
  }
  func.func @transform_1(%arg0: i32) -> (i32, i32) {
    %c0_i32 = arith.constant 0 : i32
    %c0_i32_0 = arith.constant 0 : i32
    return %arg0, %c0_i32 : i32, i32
  }
  func.func @transform_2(%arg0: i32) -> (i32, i32, i32) {
    %c0_i32 = arith.constant 0 : i32
    %c0_i32_0 = arith.constant 0 : i32
    %c0_i32_1 = arith.constant 0 : i32
    return %arg0, %c0_i32, %c0_i32_0 : i32, i32, i32
  }
}

</mosaic_0001>

<bundles_post_ra>
// kernel: tpu_custom_call.1
= control target key start
LH: loop header
LB: loop body
LE: loop exit
PB: predicated region body
PF: predicated region fallthrough
CT: control target
= control target key end

     0   :  { %v80_v1 = vmov 0   ;;  %s107_s0 = inlined_call_operand.vmem [shape: f32[8,32], index: 0, kind: input, shape index: {}]   ;;  %s108_s1 = inlined_call_operand.vmem [shape: s32[8,1], index: 1, kind: input, shape index: {}]   ;;  %s109_s2 = inlined_call_operand.hbm [shape: f32[1,1,32], index: 2, kind: output, shape index: {}]  }
   0x1   :  { %v13_v0 = vld [vmem:[%s108_s1] sm:$0xff]  ;;  %57 = vset.pattern.permute.xlu0 %v80_v1 }
   0x2   :  { %7 = vsyncpa [#allocation3], 0  ;;  %17 = vperm.xlu0 %57, %v13_v0   ;;  %v14_v2 = vlaneseq  ;;  %v12_v5 = vld [vmem:[%s107_s0] sm:$0xff]  ;;  %v81_v6 = vmov 0.0   ;;  %vm23_vm1 = vcmask 261120   ;;  %s82_s1 = smov [#allocation2]  }
   0x3   :  { %s45_s13 = sshll.u32 %s82_s1, 4  ;;  %vm37_vm2 = vcmask 253952   ;;  %s46_s13 = int_to_ptr.vmem [resolvable:$true] %s45_s13 }
   0x4   :  { %v15_v3 = vand.u32 127, %v14_v2  ;;  %s58_s0 = scalar_lea.vmem %s46_s13, 16  ;;  %s62_s14 = scalar_lea.vmem %s46_s13, 32 }
   0x5   :  { %p59_p0 = scmp.ne.s32.totalorder %s46_s13, %s58_s0  ;;  %p63_p1 = scmp.lt.s32.totalorder %s46_s13, %s46_s13 }
   0x6   :  { %p64_p2 = scmp.lt.s32.totalorder %s62_s14, %s58_s0 }
   0x8   :  { %p65_p3 = por %p64_p2, %p63_p1 }
   0xa   :  { %p66_p4 = pnand %p65_p3, %p59_p0 }
  0x7d   :  { %v18_v4 = vpop.permute.xlu0 %17 }
  0x7e   :  { %vm19_vm0 = vcmp.eq.s32.totalorder %v15_v3, %v18_v4 }
  0x7f   :  { %v53_v7 = vsel %vm19_vm0, 1.0, %v81_v6 }
  0x80   :  { %v22_v8 = vmul.f32 %v53_v7, %v12_v5 }
  0x82   :  { %v24_v9 = vsel %vm23_vm1, %v22_v8, 0.0 }
  0x83   :  { %25 = vadd.xlane.f32.xlu0 %v24_v9 }
 0x10c   :  { %v26_v10 = vpop.xlane.xlu0 %25 }
 0x10d   :  { %v27_v11 = vsub.f32 %v12_v5, %v26_v10 }
 0x10f   :  { %v28_v12 = vadd.f32 1.0, %v27_v11 }
 0x111   :  { %v29_v13 = vmax.f32 %v28_v12, 0.0 }
 0x113   :  { %v30_v14 = vsel %vm23_vm1, %v29_v13, 0.0 }
 0x114   :  { %v31_v15 = vrot.slane %v30_v14, 4 }
 0x116   :  { %v32_v16 = vadd.f32 %v31_v15, %v30_v14 }
 0x118   :  { %v33_v17 = vrot.slane %v32_v16, 2 }
 0x11a   :  { %v34_v18 = vadd.f32 %v33_v17, %v32_v16 }
 0x11c   :  { %v35_v19 = vrot.slane %v34_v18, 1 }
 0x11e   :  { %v36_v20 = vadd.f32 %v35_v19, %v34_v18 }
 0x120   :  { %38 = vst.msk [vmem:[#allocation2] sm:$0x1] %vm37_vm2, %v36_v20 }
 0x121   :  { %69 = shalt.err (!%p66_p4)
}
 0x122   :  { %48 = dma.vmem_to_hbm [thread:$0]  %s46_s13, 16, %s109_s2, [#allocation3]  }
 0x123   :  { %78 = dma.done.wait [#allocation3], 16  }
 0x124   :  { %79 = vsyncadd [#allocation3], 4294967280 }
 0x125   :  { %52 = vsyncpa [#allocation3], 1 }

</bundles_post_ra>
